<compile_context>
chip_gen: v6e
topology: v6e:2x2x1
jax: 0.10.0
libtpu: 0.0.40
codegen_flags: <defaults>
</compile_context>

<pallas_src>
import jax
import jax.numpy as jnp
from jax import lax
from jax.experimental import pallas as pl
from jax.experimental.pallas import tpu as pltpu


# --------------------------------------------------------------------------
# Kernels
# --------------------------------------------------------------------------
def _abn_single_pass_kernel(x_ref, gamma_ref, beta_ref, ab_ref, o_ref):
    """Stats over (N, HW) for one channel tile + fused scale/shift.

    x_ref:     (N, TC, HW)  VMEM
    gamma_ref: (TC, 1)      VMEM  f32
    beta_ref:  (TC, 1)      VMEM  f32
    ab_ref:    (3,)         SMEM  f32 -> [a, b, eps]
    o_ref:     (N, TC, HW)  VMEM
    """
    n, tc, hw = x_ref.shape
    a = ab_ref[0]
    b = ab_ref[1]
    eps = ab_ref[2]
    unroll = n <= 4

    # Cheap per-channel shift (approx mean of the first batch slab) so the
    # sum / sum-of-squares formulation below does not lose precision for
    # large-mean / small-variance channels.
    mu0 = jnp.mean(x_ref[0].astype(jnp.float32), axis=1, keepdims=True)  # (TC,1)

    # Accumulate over N first with plain VPU adds (per-slab f32 temporaries
    # only); the cross-lane (HW) XLU reduce happens once per channel row.
    def stats_body(i, carry):
        s, q = carry
        xs = x_ref[i].astype(jnp.float32) - mu0            # (TC, HW)
        return s + xs, q + xs * xs

    zero = jnp.zeros((tc, hw), jnp.float32)
    s_acc, q_acc = lax.fori_loop(0, n, stats_body, (zero, zero), unroll=unroll)

    inv_count = 1.0 / float(n * hw)
    ms = jnp.sum(s_acc, axis=1, keepdims=True) * inv_count  # E[x - mu0]   (TC,1)
    mq = jnp.sum(q_acc, axis=1, keepdims=True) * inv_count  # E[(x-mu0)^2] (TC,1)
    var = jnp.maximum(mq - ms * ms, 0.0)                    # biased variance
    mean = mu0 + ms
    inv_std = lax.rsqrt(var + eps)                          # (TC, 1)

    gamma = gamma_ref[...]                                  # (TC, 1) f32
    beta = beta_ref[...]
    # y = a*x + b*(gamma*(x-mean)*inv_std + beta) == scale*x + shift
    scale = a + b * gamma * inv_std
    shift = b * (beta - gamma * mean * inv_std)

    def apply_body(i, _):
        xs = x_ref[i].astype(jnp.float32)                   # (TC, HW)
        o_ref[i] = (scale * xs + shift).astype(o_ref.dtype)
        return 0

    lax.fori_loop(0, n, apply_body, 0, unroll=unroll)


def _make_stats_kernel(hw_total, need_mask):
    """Pass 1 of the two-pass fallback: per-channel sum / sum-of-squares."""

    def _abn_stats_kernel(x_ref, sum_ref, sq_ref):
        # Grid: (channel tiles, HW tiles); HW (reduction) axis last,
        # "arbitrary"; (TC, 1) output blocks are resident accumulators.
        n, tc, tl = x_ref.shape
        l = pl.program_id(1)

        @pl.when(l == 0)
        def _init():
            sum_ref[...] = jnp.zeros_like(sum_ref)
            sq_ref[...] = jnp.zeros_like(sq_ref)

        if need_mask:
            lane = lax.broadcasted_iota(jnp.int32, (tc, tl), 1)
            valid = (l * tl + lane) < hw_total              # partial last tile

        # Sum over N first (VPU adds); one cross-lane reduce per channel row.
        def body(i, carry):
            s, q = carry
            xs = x_ref[i].astype(jnp.float32)               # (TC, TL)
            if need_mask:
                xs = jnp.where(valid, xs, 0.0)
            return s + xs, q + xs * xs

        zero = jnp.zeros((tc, tl), jnp.float32)
        s_acc, q_acc = lax.fori_loop(0, n, body, (zero, zero), unroll=n <= 4)

        sum_ref[...] += jnp.sum(s_acc, axis=1, keepdims=True)
        sq_ref[...] += jnp.sum(q_acc, axis=1, keepdims=True)

    return _abn_stats_kernel


def _abn_apply_kernel(x_ref, scale_ref, shift_ref, o_ref):
    """Pass 2 of the two-pass fallback: y = scale*x + shift."""
    n = x_ref.shape[0]
    scale = scale_ref[...]                                  # (TC, 1) f32
    shift = shift_ref[...]

    def body(i, _):
        xs = x_ref[i].astype(jnp.float32)                   # (TC, TL)
        o_ref[i] = (scale * xs + shift).astype(o_ref.dtype)
        return 0

    lax.fori_loop(0, n, body, 0, unroll=n <= 4)


# --------------------------------------------------------------------------
# Tiling helpers
# --------------------------------------------------------------------------
def _vmem_capacity_bytes():
    try:
        return int(pltpu.get_tpu_info().vmem_capacity_bytes)
    except Exception:
        return 64 * 1024 * 1024  # conservative default (v7x per-core VMEM)


def _round_up(x, m):
    return ((x + m - 1) // m) * m


def _floor_to(x, m):
    return (x // m) * m


# --------------------------------------------------------------------------
# Wrapper
# --------------------------------------------------------------------------
def adaptive_batch_norm_2d(x_nchw, gamma, beta, a, b, eps=1e-5,
                           _block_budget_override=None):
    """Forward of AdaptiveBatchNorm2d. x_nchw: (N, C, H, W); gamma/beta: (C,)."""
    N, C, H, W = x_nchw.shape
    HW = H * W
    orig_dtype = x_nchw.dtype
    itemsize = jnp.dtype(orig_dtype).itemsize
    # Dtype-aware sublane quantum for the channel (second-minor) block dim:
    # 8 for f32, 16 for bf16/f16, 32 for int8/fp8.
    cq = max(8, 32 // itemsize)

    # Free reshape (no transpose, no extra HBM traffic): NCHW -> (N, C, H*W).
    x = x_nchw.reshape(N, C, HW)
    gamma_c1 = jnp.asarray(gamma, dtype=jnp.float32).reshape(C, 1)
    beta_c1 = jnp.asarray(beta, dtype=jnp.float32).reshape(C, 1)
    a_s = jnp.asarray(a, dtype=jnp.float32).reshape(())
    b_s = jnp.asarray(b, dtype=jnp.float32).reshape(())
    eps_s = jnp.asarray(eps, dtype=jnp.float32).reshape(())

    # VMEM budget from the real pipeline footprint: double-buffered input and
    # output blocks in the source dtype plus ~6 HW-sized f32 rows per channel
    # (2 shifted-sum accumulators + in-flight slabs). Leave headroom for the
    # tiny gamma/beta blocks, semaphores and compiler scratch.
    vmem_cap = _vmem_capacity_bytes()
    vmem_limit = int(vmem_cap * 7 // 8)
    budget = (vmem_limit - (4 << 20) if _block_budget_override is None
              else int(_block_budget_override))

    # ---------------- Single-pass path: channel tile holds full (N, HW) -----
    per_channel = 4 * N * HW * itemsize + 24 * HW
    if budget >= per_channel * min(C, cq):
        tc_cap = max(cq, _floor_to(budget // per_channel, cq))
        # Blocks beyond a few MiB stop helping the pipeline; prefer more grid
        # steps (DMA overlap, and both TensorCores get work on v7x).
        soft = max(cq, _floor_to((8 << 20) // max(N * HW * itemsize, 1), cq))
        tc = max(cq, min(tc_cap, soft))
        if tc >= C:
            # Keep >= 2 steps on the "parallel" channel axis whenever C allows
            # it (v7x has 2 TensorCores; costs ~nothing on v5e/v6e).
            tc = C if C <= cq else max(cq, _round_up((C + 1) // 2, cq))
        grid_c = pl.cdiv(C, tc)

        ab = jnp.stack([a_s, b_s, eps_s])
        out = pl.pallas_call(
            _abn_single_pass_kernel,
            out_shape=jax.ShapeDtypeStruct((N, C, HW), orig_dtype),
            grid_spec=pltpu.PrefetchScalarGridSpec(
                num_scalar_prefetch=0,
                grid=(grid_c,),
                in_specs=[
                    pl.BlockSpec((N, tc, HW), lambda c: (0, c, 0)),
                    pl.BlockSpec((tc, 1), lambda c: (c, 0)),
                    pl.BlockSpec((tc, 1), lambda c: (c, 0)),
                    pl.BlockSpec(memory_space=pltpu.SMEM),
                ],
                out_specs=pl.BlockSpec((N, tc, HW), lambda c: (0, c, 0)),
            ),
            compiler_params=pltpu.CompilerParams(
                dimension_semantics=("parallel",),
                vmem_limit_bytes=vmem_limit,
            ),
        )(x, gamma_c1, beta_c1, ab)
        return out.reshape(N, C, H, W)

    # ---------------- Two-pass fallback: tile H*W as well (3x HBM traffic) ---
    tc2 = min(C, cq)
    per_lane = tc2 * (4 * N * itemsize + 16)
    tl_cap = _floor_to(budget // per_lane, 128)
    if HW <= 128:
        tl = HW
    else:
        tl = max(128, tl_cap)
        if tl >= HW:
            tl = HW
    # TODO(synk): the pathological huge-N / tiny-HW case would also need N
    # tiling; not handled here.
    grid2 = (pl.cdiv(C, tc2), pl.cdiv(HW, tl))
    need_mask = (HW % tl) != 0

    # Pass 1: per-channel sum and sum-of-squares (masked partial HW tail).
    sums, sqs = pl.pallas_call(
        _make_stats_kernel(HW, need_mask),
        out_shape=(jax.ShapeDtypeStruct((C, 1), jnp.float32),
                   jax.ShapeDtypeStruct((C, 1), jnp.float32)),
        grid_spec=pltpu.PrefetchScalarGridSpec(
            num_scalar_prefetch=0,
            grid=grid2,
            in_specs=[pl.BlockSpec((N, tc2, tl), lambda c, l: (0, c, l))],
            out_specs=(pl.BlockSpec((tc2, 1), lambda c, l: (c, 0)),
                       pl.BlockSpec((tc2, 1), lambda c, l: (c, 0))),
        ),
        compiler_params=pltpu.CompilerParams(
            dimension_semantics=("parallel", "arbitrary"),
            vmem_limit_bytes=vmem_limit,
        ),
    )(x)

    # Tiny (C,1)-sized math: fold a, b, gamma, beta, mean, inv_std into a
    # per-channel scale/shift so pass 2 is 2 VPU ops per element.
    cnt = jnp.float32(N * HW)
    mean = sums / cnt
    # TODO(synk): E[x^2]-mean^2 in the fallback can lose precision for
    # large-mean / tiny-variance channels (an exact centered pass would cost a
    # third HBM sweep of x); clamped at 0.
    var = jnp.maximum(sqs / cnt - mean * mean, 0.0)
    inv_std = lax.rsqrt(var + eps_s)
    scale = a_s + b_s * gamma_c1 * inv_std                  # (C, 1) f32
    shift = b_s * (beta_c1 - gamma_c1 * mean * inv_std)     # (C, 1) f32

    # Pass 2: apply fused scale/shift.
    out = pl.pallas_call(
        _abn_apply_kernel,
        out_shape=jax.ShapeDtypeStruct((N, C, HW), orig_dtype),
        grid_spec=pltpu.PrefetchScalarGridSpec(
            num_scalar_prefetch=0,
            grid=grid2,
            in_specs=[
                pl.BlockSpec((N, tc2, tl), lambda c, l: (0, c, l)),
                pl.BlockSpec((tc2, 1), lambda c, l: (c, 0)),
                pl.BlockSpec((tc2, 1), lambda c, l: (c, 0)),
            ],
            out_specs=pl.BlockSpec((N, tc2, tl), lambda c, l: (0, c, l)),
        ),
        compiler_params=pltpu.CompilerParams(
            dimension_semantics=("parallel", "parallel"),
            vmem_limit_bytes=vmem_limit,
        ),
    )(x, scale, shift)
    return out.reshape(N, C, H, W)


# --------------------------------------------------------------------------
# Reference & self-test
# --------------------------------------------------------------------------
def _reference(x_nchw, gamma, beta, a, b, eps=1e-5):
    mean = jnp.mean(x_nchw, axis=(0, 2, 3), keepdims=True)
    var = jnp.mean((x_nchw - mean) ** 2, axis=(0, 2, 3), keepdims=True)
    xhat = (x_nchw - mean) / jnp.sqrt(var + eps)
    bn = gamma.reshape(1, -1, 1, 1) * xhat + beta.reshape(1, -1, 1, 1)
    return a * x_nchw + b * bn


if __name__ == "__main__":
    key = jax.random.PRNGKey(0)
    kx, kg, kb, kx2 = jax.random.split(key, 4)

    # Module parameter shapes from __init__: bn.weight/bias (C,), a/b (1,1,1,1).
    N, C, H, W = 2, 4, 16, 16
    x = jax.random.normal(kx, (N, C, H, W), dtype=jnp.float32)
    gamma = 1.0 + 0.1 * jax.random.normal(kg, (C,), dtype=jnp.float32)
    beta = 0.1 * jax.random.normal(kb, (C,), dtype=jnp.float32)
    a_param = 0.75
    b_param = 0.25

    ref = _reference(x, gamma, beta, a_param, b_param)

    # 1) Single-pass (channel-tiled) path.
    out = jax.block_until_ready(
        adaptive_batch_norm_2d(x, gamma, beta, a_param, b_param))
    assert out.shape == (N, C, H, W)
    assert jnp.allclose(out, ref, atol=1e-5, rtol=1e-5)

    # 2) Two-pass fallback (stats + apply, HW tiled evenly), via a tiny budget.
    out2 = jax.block_until_ready(
        adaptive_batch_norm_2d(x, gamma, beta, a_param, b_param,
                               _block_budget_override=4096))
    assert jnp.allclose(out2, ref, atol=1e-5, rtol=1e-5)

    # 3) Partial (cdiv) tiles: C=12 -> partial channel tile on the single-pass
    #    path; HW=196 -> masked partial HW tail on the two-pass path.
    N3, C3, H3, W3 = 2, 12, 14, 14
    x3 = jax.random.normal(kx2, (N3, C3, H3, W3), dtype=jnp.float32)
    g3 = 1.0 + 0.1 * jnp.arange(C3, dtype=jnp.float32) / C3
    b3 = 0.05 * jnp.arange(C3, dtype=jnp.float32)
    ref3 = _reference(x3, g3, b3, a_param, b_param)

    out3 = jax.block_until_ready(
        adaptive_batch_norm_2d(x3, g3, b3, a_param, b_param))
    assert jnp.allclose(out3, ref3, atol=1e-5, rtol=1e-5)

    out4 = jax.block_until_ready(
        adaptive_batch_norm_2d(x3, g3, b3, a_param, b_param,
                               _block_budget_override=2048))
    assert jnp.allclose(out4, ref3, atol=1e-5, rtol=1e-5)

    print("KERNEL_OK")
</pallas_src>

<mosaic_0001>
module attributes {stable_mosaic.version = 11 : i64} {
  func.func @_abn_single_pass_kernel(%arg0: i32, %arg1: memref<2x4x256xf32, #tpu.memory_space<vmem>>, %arg2: memref<4x1xf32, #tpu.memory_space<vmem>>, %arg3: memref<4x1xf32, #tpu.memory_space<vmem>>, %arg4: memref<3xf32, #tpu.memory_space<smem>>, %arg5: memref<2x4x256xf32, #tpu.memory_space<vmem>>) attributes {dimension_semantics = [#tpu.dimension_semantics<parallel>], iteration_bounds = array<i64: 1>, scalar_prefetch = 0 : i64, scratch_operands = 0 : i64, tpu.core_type = #tpu.core_type<tc>, window_params = [{transform_indices = @transform_0, window_bounds = array<i64: 2, 4, 256>}, {transform_indices = @transform_1, window_bounds = array<i64: 4, 1>}, {transform_indices = @transform_2, window_bounds = array<i64: 4, 1>}, {transform_indices = @transform_3, window_bounds = array<i64: 3>}, {transform_indices = @transform_4, window_bounds = array<i64: 2, 4, 256>}]} {
    %c0 = arith.constant 0 : index
    %0 = memref.load %arg4[%c0] : memref<3xf32, #tpu.memory_space<smem>>
    %c1 = arith.constant 1 : index
    %1 = memref.load %arg4[%c1] : memref<3xf32, #tpu.memory_space<smem>>
    %c2 = arith.constant 2 : index
    %2 = memref.load %arg4[%c2] : memref<3xf32, #tpu.memory_space<smem>>
    %c0_0 = arith.constant 0 : index
    %c0_1 = arith.constant 0 : index
    %c0_2 = arith.constant 0 : index
    %3 = vector.load %arg1[%c0_0, %c0_1, %c0_2] : memref<2x4x256xf32, #tpu.memory_space<vmem>>, vector<1x4x256xf32>
    %4 = vector.shape_cast %3 : vector<1x4x256xf32> to vector<4x256xf32>
    %cst = arith.constant dense<0.000000e+00> : vector<4xf32>
    %5 = vector.multi_reduction <add>, %4, %cst [1] : vector<4x256xf32> to vector<4xf32>
    %6 = vector.shape_cast %5 : vector<4xf32> to vector<4x1xf32>
    %cst_3 = arith.constant 2.560000e+02 : f32
    %7 = vector.broadcast %cst_3 : f32 to vector<4x1xf32>
    %8 = arith.divf %6, %7 : vector<4x1xf32>
    %cst_4 = arith.constant 0.000000e+00 : f32
    %9 = vector.broadcast %cst_4 : f32 to vector<4x256xf32>
    %c0_i32 = arith.constant 0 : i32
    %10 = arith.index_cast %c0_i32 : i32 to index
    %c0_5 = arith.constant 0 : index
    %c0_6 = arith.constant 0 : index
    %11 = vector.load %arg1[%10, %c0_5, %c0_6] : memref<2x4x256xf32, #tpu.memory_space<vmem>>, vector<1x4x256xf32>
    %12 = vector.shape_cast %11 : vector<1x4x256xf32> to vector<4x256xf32>
    %13 = vector.broadcast %8 : vector<4x1xf32> to vector<4x256xf32>
    %14 = arith.subf %12, %13 : vector<4x256xf32>
    %15 = arith.addf %9, %14 : vector<4x256xf32>
    %16 = arith.mulf %14, %14 : vector<4x256xf32>
    %17 = arith.addf %9, %16 : vector<4x256xf32>
    %c1_i32 = arith.constant 1 : i32
    %18 = arith.index_cast %c1_i32 : i32 to index
    %c0_7 = arith.constant 0 : index
    %c0_8 = arith.constant 0 : index
    %19 = vector.load %arg1[%18, %c0_7, %c0_8] : memref<2x4x256xf32, #tpu.memory_space<vmem>>, vector<1x4x256xf32>
    %20 = vector.shape_cast %19 : vector<1x4x256xf32> to vector<4x256xf32>
    %21 = vector.broadcast %8 : vector<4x1xf32> to vector<4x256xf32>
    %22 = arith.subf %20, %21 : vector<4x256xf32>
    %23 = arith.addf %15, %22 : vector<4x256xf32>
    %24 = arith.mulf %22, %22 : vector<4x256xf32>
    %25 = arith.addf %17, %24 : vector<4x256xf32>
    %c2_i32 = arith.constant 2 : i32
    %cst_9 = arith.constant dense<0.000000e+00> : vector<4xf32>
    %26 = vector.multi_reduction <add>, %23, %cst_9 [1] : vector<4x256xf32> to vector<4xf32>
    %27 = vector.shape_cast %26 : vector<4xf32> to vector<4x1xf32>
    %cst_10 = arith.constant 0.001953125 : f32
    %28 = vector.broadcast %cst_10 : f32 to vector<4x1xf32>
    %29 = arith.mulf %27, %28 : vector<4x1xf32>
    %cst_11 = arith.constant dense<0.000000e+00> : vector<4xf32>
    %30 = vector.multi_reduction <add>, %25, %cst_11 [1] : vector<4x256xf32> to vector<4xf32>
    %31 = vector.shape_cast %30 : vector<4xf32> to vector<4x1xf32>
    %cst_12 = arith.constant 0.001953125 : f32
    %32 = vector.broadcast %cst_12 : f32 to vector<4x1xf32>
    %33 = arith.mulf %31, %32 : vector<4x1xf32>
    %34 = arith.mulf %29, %29 : vector<4x1xf32>
    %35 = arith.subf %33, %34 : vector<4x1xf32>
    %cst_13 = arith.constant 0.000000e+00 : f32
    %36 = vector.broadcast %cst_13 : f32 to vector<4x1xf32>
    %37 = arith.maximumf %35, %36 : vector<4x1xf32>
    %38 = arith.addf %8, %29 : vector<4x1xf32>
    %39 = vector.broadcast %2 : f32 to vector<4x1xf32>
    %40 = arith.addf %37, %39 : vector<4x1xf32>
    %41 = math.rsqrt %40 : vector<4x1xf32>
    %c0_14 = arith.constant 0 : index
    %c0_15 = arith.constant 0 : index
    %42 = vector.load %arg2[%c0_14, %c0_15] : memref<4x1xf32, #tpu.memory_space<vmem>>, vector<4x1xf32>
    %c0_16 = arith.constant 0 : index
    %c0_17 = arith.constant 0 : index
    %43 = vector.load %arg3[%c0_16, %c0_17] : memref<4x1xf32, #tpu.memory_space<vmem>>, vector<4x1xf32>
    %44 = vector.broadcast %1 : f32 to vector<4x1xf32>
    %45 = arith.mulf %44, %42 : vector<4x1xf32>
    %46 = arith.mulf %45, %41 : vector<4x1xf32>
    %47 = vector.broadcast %0 : f32 to vector<4x1xf32>
    %48 = arith.addf %47, %46 : vector<4x1xf32>
    %49 = arith.mulf %42, %38 : vector<4x1xf32>
    %50 = arith.mulf %49, %41 : vector<4x1xf32>
    %51 = arith.subf %43, %50 : vector<4x1xf32>
    %52 = vector.broadcast %1 : f32 to vector<4x1xf32>
    %53 = arith.mulf %52, %51 : vector<4x1xf32>
    %c0_i32_18 = arith.constant 0 : i32
    %54 = arith.index_cast %c0_i32_18 : i32 to index
    %c0_19 = arith.constant 0 : index
    %c0_20 = arith.constant 0 : index
    %55 = vector.load %arg1[%54, %c0_19, %c0_20] : memref<2x4x256xf32, #tpu.memory_space<vmem>>, vector<1x4x256xf32>
    %56 = vector.shape_cast %55 : vector<1x4x256xf32> to vector<4x256xf32>
    %57 = vector.broadcast %48 : vector<4x1xf32> to vector<4x256xf32>
    %58 = arith.mulf %57, %56 : vector<4x256xf32>
    %59 = vector.broadcast %53 : vector<4x1xf32> to vector<4x256xf32>
    %60 = arith.addf %58, %59 : vector<4x256xf32>
    %61 = arith.index_cast %c0_i32_18 : i32 to index
    %c0_21 = arith.constant 0 : index
    %c0_22 = arith.constant 0 : index
    %62 = vector.load %arg5[%61, %c0_21, %c0_22] : memref<2x4x256xf32, #tpu.memory_space<vmem>>, vector<1x4x256xf32>
    %63 = vector.shape_cast %62 : vector<1x4x256xf32> to vector<4x256xf32>
    %64 = vector.shape_cast %60 : vector<4x256xf32> to vector<1x4x256xf32>
    tpu.vector_store %arg5[%61, %c0_21, %c0_22], %64 {strides = array<i32>} : memref<2x4x256xf32, #tpu.memory_space<vmem>>, vector<1x4x256xf32>,
    %c1_i32_23 = arith.constant 1 : i32
    %65 = arith.index_cast %c1_i32_23 : i32 to index
    %c0_24 = arith.constant 0 : index
    %c0_25 = arith.constant 0 : index
    %66 = vector.load %arg1[%65, %c0_24, %c0_25] : memref<2x4x256xf32, #tpu.memory_space<vmem>>, vector<1x4x256xf32>
    %67 = vector.shape_cast %66 : vector<1x4x256xf32> to vector<4x256xf32>
    %68 = vector.broadcast %48 : vector<4x1xf32> to vector<4x256xf32>
    %69 = arith.mulf %68, %67 : vector<4x256xf32>
    %70 = vector.broadcast %53 : vector<4x1xf32> to vector<4x256xf32>
    %71 = arith.addf %69, %70 : vector<4x256xf32>
    %72 = arith.index_cast %c1_i32_23 : i32 to index
    %c0_26 = arith.constant 0 : index
    %c0_27 = arith.constant 0 : index
    %73 = vector.load %arg5[%72, %c0_26, %c0_27] : memref<2x4x256xf32, #tpu.memory_space<vmem>>, vector<1x4x256xf32>
    %74 = vector.shape_cast %73 : vector<1x4x256xf32> to vector<4x256xf32>
    %75 = vector.shape_cast %71 : vector<4x256xf32> to vector<1x4x256xf32>
    tpu.vector_store %arg5[%72, %c0_26, %c0_27], %75 {strides = array<i32>} : memref<2x4x256xf32, #tpu.memory_space<vmem>>, vector<1x4x256xf32>,
    %c2_i32_28 = arith.constant 2 : i32
    return
  }
  func.func @transform_0(%arg0: i32) -> (i32, i32, i32) {
    %c0_i32 = arith.constant 0 : i32
    %c0_i32_0 = arith.constant 0 : i32
    %c0_i32_1 = arith.constant 0 : i32
    return %c0_i32, %arg0, %c0_i32_0 : i32, i32, i32
  }
  func.func @transform_1(%arg0: i32) -> (i32, i32) {
    %c0_i32 = arith.constant 0 : i32
    %c0_i32_0 = arith.constant 0 : i32
    return %arg0, %c0_i32 : i32, i32
  }
  func.func @transform_2(%arg0: i32) -> (i32, i32) {
    %c0_i32 = arith.constant 0 : i32
    %c0_i32_0 = arith.constant 0 : i32
    return %arg0, %c0_i32 : i32, i32
  }
  func.func @transform_3(%arg0: i32) -> i32 {
    %c0_i32 = arith.constant 0 : i32
    %c0_i32_0 = arith.constant 0 : i32
    return %c0_i32 : i32
  }
  func.func @transform_4(%arg0: i32) -> (i32, i32, i32) {
    %c0_i32 = arith.constant 0 : i32
    %c0_i32_0 = arith.constant 0 : i32
    %c0_i32_1 = arith.constant 0 : i32
    return %c0_i32, %arg0, %c0_i32_0 : i32, i32, i32
  }
}

</mosaic_0001>

<bundles_post_ra>
// kernel: tpu_custom_call.1
= control target key start
LH: loop header
LB: loop body
LE: loop exit
PB: predicated region body
PF: predicated region fallthrough
CT: control target
= control target key end

     0   :  { %9 = vsyncpa [#allocation3], 0  ;;  %s309_s0 = inlined_call_operand.hbm [shape: f32[2,4,256], index: 0, kind: input, shape index: {}]   ;;  %s310_s1 = inlined_call_operand.vmem [shape: f32[4,1], index: 1, kind: input, shape index: {}]   ;;  %s311_s2 = inlined_call_operand.vmem [shape: f32[4,1], index: 2, kind: input, shape index: {}]   ;;  %s312_s3 = inlined_call_operand.vmem [shape: f32[3], index: 3, kind: input, shape index: {}]   ;;  %s313_s4 = inlined_call_operand.hbm [shape: f32[2,4,256], index: 4, kind: output, shape index: {}]  }
   0x1   :  { %10 = vsyncpa [#allocation5], 0 }
   0x2   :  { %11 = vsyncpa [#allocation4], 0  ;;  %s239_s15 = smov [#allocation2]   ;;  %s34_s19 = sshll.u32 %s312_s3, 4  ;;  %s35_s19 = int_to_ptr.vmem [resolvable:$true] %s34_s19 }
   0x3   :  { %s17_s16 = sshll.u32 %s239_s15, 4  ;;  %s18_s16 = int_to_ptr.vmem [resolvable:$true] %s17_s16 }
   0x4   :  { %s189_s20 = scalar_lea.vmem %s18_s16, 256  ;;  %p194_p1 = scmp.lt.s32.totalorder %s18_s16, %s18_s16 }
   0x5   :  { %p190_p0 = scmp.ne.s32.totalorder %s18_s16, %s189_s20  ;;  %p195_p2 = scmp.lt.s32.totalorder %s189_s20, %s189_s20 }
   0x7   :  { %p196_p3 = por %p195_p2, %p194_p1 }
   0x9   :  { %p197_p4 = pnand %p196_p3, %p190_p0 }
   0xb   :  { %200 = shalt.err (!%p197_p4)
}
   0xc   :  { %s240_s21 = smov 128   ;;  %s241_s22 = smov 8  }
   0xd   :  { %23 = dma.hbm_to_vmem [thread:$0]  %s309_s0, 256, %s18_s16, [#allocation3], %s240_s21, %s240_s21, %s241_s22  }
   0xe   :  { %s201_s25 = scalar_lea.vmem %s35_s19, 16  ;;  %p206_p6 = scmp.lt.s32.totalorder %s35_s19, %s35_s19 }
   0xf   :  { %p202_p5 = scmp.ne.s32.totalorder %s35_s19, %s201_s25  ;;  %p207_p7 = scmp.lt.s32.totalorder %s201_s25, %s201_s25 }
  0x11   :  { %p208_p8 = por %p207_p7, %p206_p6 }
  0x13   :  { %p209_p9 = pnand %p208_p8, %p202_p5 }
  0x15   :  { %212 = shalt.err (!%p209_p9)
}
  0x16   :  { %s242_s3 = smov [#allocation6]  }
  0x17   :  { %37 = dma.vmem_to_smem %s35_s19, 16, %s242_s3, [#allocation5]  }
  0x18   :  { %233 = dma.done.wait [#allocation3], 256  }
  0x19   :  { %234 = vsyncadd [#allocation3], 4294967040 }
  0x1a   :  { %235 = dma.done.wait [#allocation5], 16  }
  0x1b   :  { %236 = vsyncadd [#allocation5], 4294967280 }
  0x1c   :  { %44 = sfence }
  0x1d   :  { %v280_v0 = vld [vmem:[#allocation2] sm:$0xff]  ;;  %vm52_vm0 = vcmask 1043456   ;;  %v243_v5 = vmov 839922192   ;;  %v64_v7 = vlaneseq  ;;  %v74_v13 = vld [vmem:[#allocation2 + $0x8] sm:$0xff]  ;;  %v244_v29 = vmov 0  }
  0x1e   :  { %v284_v1 = vcombine.high %v280_v0, %v280_v0  ;;  %v53_v2 = vsel %vm52_vm0, %v280_v0, 0.0  ;;  %v62_v6 = vunpack.c.l.s4 %v243_v5  ;;  %175 = vset.pattern.permute.xlu1 %v244_v29  ;;  %176 = vset.pattern.permute.xlu0 %v244_v29  ;;  %s167_s0 = sld [smem:[#allocation6 + $0x2]]  ;;  %v104_v41 = vld [vmem:[%s310_s1] sm:$0xf]  ;;  %v136_v52 = vcombine.high %v74_v13, %v74_v13  ;;  %s245_s1 = smov [#allocation7]  }
  0x1f   :  { %v65_v9 = vshrl.u32 %v64_v7, 7  ;;  %s166_s26 = sld [smem:[#allocation6 + $0x1]]  ;;  %v105_v46 = vld [vmem:[%s311_s2] sm:$0xf]  ;;  %s153_s6 = sshll.u32 %s245_s1, 4  ;;  %s154_s6 = int_to_ptr.vmem [resolvable:$true] %s153_s6 }
  0x20   :  { %v54_v3 = vsel %vm52_vm0, %v284_v1, 0.0  ;;  %v63_v8 = vunpack.c.0.s8 %v62_v6  ;;  %s45_s27 = sld [smem:[#allocation6]]  ;;  %s213_s2 = scalar_lea.vmem %s154_s6, 256 }
  0x21   :  { %v55_v4 = vadd.f32 %v54_v3, %v53_v2  ;;  %p214_p10 = scmp.ne.s32.totalorder %s154_s6, %s213_s2  ;;  %p218_p11 = scmp.lt.s32.totalorder %s154_s6, %s154_s6 }
  0x22   :  { %v66_v10 = vsub.s32 %v63_v8, %v65_v9  ;;  %p219_p12 = scmp.lt.s32.totalorder %s213_s2, %s213_s2 }
  0x23   :  { %56 = vadd.xlane.f32.xlu0 %v55_v4 }
  0x24   :  { %v101_v36 = vstv %s167_s0  ;;  %p220_p13 = por %p219_p12, %p218_p11 }
  0x25   :  { %v106_v39 = vstv %s166_s26 }
  0x26   :  { %v107_v42 = vmul.f32 %v106_v39, %v104_v41  ;;  %v109_v45 = vstv %s45_s27  ;;  %p221_p0 = pnand %p220_p13, %p214_p10 }
  0xac   :  { %v57_v11 = vpop.xlane.xlu0 %56 }
  0xad   :  { %v59_v12 = vmul.f32 0.00390625, %v57_v11 }
  0xaf   :  { %v67_v14 = vrot.slane %v59_v12, %v66_v10 }
  0xb1   :  { %v69_v15 = vsub.f32 %v280_v0, %v67_v14  ;;  %v75_v16 = vsub.f32 %v74_v13, %v67_v14 }
  0xb3   :  { %v76_v17 = vadd.f32 %v75_v16, %v69_v15  ;;  %v71_v18 = vmul.f32 %v69_v15, %v69_v15  ;;  %v77_v19 = vmul.f32 %v75_v16, %v75_v16 }
  0xb5   :  { %v80_v20 = vcombine.high %v76_v17, %v76_v17  ;;  %v78_v21 = vadd.f32 %v77_v19, %v71_v18  ;;  %v82_v22 = vsel %vm52_vm0, %v76_v17, 0.0 }
  0xb7   :  { %v83_v23 = vsel %vm52_vm0, %v80_v20, 0.0  ;;  %v89_v24 = vcombine.high %v78_v21, %v78_v21  ;;  %v91_v26 = vsel %vm52_vm0, %v78_v21, 0.0 }
  0xb8   :  { %v84_v25 = vadd.f32 %v83_v23, %v82_v22 }
  0xb9   :  { %v92_v27 = vsel %vm52_vm0, %v89_v24, 0.0 }
  0xba   :  { %85 = vadd.xlane.f32.xlu0 %v84_v25  ;;  %v93_v28 = vadd.f32 %v92_v27, %v91_v26 }
  0xbc   :  { %94 = vadd.xlane.f32.xlu1 %v93_v28 }
 0x143   :  { %v86_v30 = vpop.xlane.xlu0 %85 }
 0x144   :  { %v87_v31 = vmul.f32 0.001953125, %v86_v30 }
 0x145   :  { %v95_v32 = vpop.xlane.xlu1 %94 }
 0x146   :  { %v97_v33 = vmul.f32 %v87_v31, %v87_v31  ;;  %v96_v34 = vmul.f32 0.001953125, %v95_v32  ;;  %v100_v40 = vadd.f32 %v87_v31, %v59_v12 }
 0x148   :  { %v98_v35 = vsub.f32 %v96_v34, %v97_v33  ;;  %v111_v43 = vmul.f32 %v104_v41, %v100_v40 }
 0x14a   :  { %v99_v37 = vmax.f32 %v98_v35, 0.0 }
 0x14c   :  { %v102_v38 = vadd.f32 %v101_v36, %v99_v37 }
 0x14e   :  { %179 = vrsqrt.f32 %v102_v38 }
 0x15b   :  { %v180_v44 = vpop.eup %179 }
 0x15c   :  { %v108_v47 = vmul.f32 %v180_v44, %v107_v42  ;;  %v112_v48 = vmul.f32 %v180_v44, %v111_v43 }
 0x15e   :  { %v110_v49 = vadd.f32 %v109_v45, %v108_v47  ;;  %v113_v50 = vsub.f32 %v105_v46, %v112_v48 }
 0x160   :  { %117 = vperm.xlu1 %175, %v110_v49   ;;  %v114_v51 = vmul.f32 %v113_v50, %v106_v39 }
 0x162   :  { %124 = vperm.xlu0 %176, %v114_v51  }
 0x1db   :  { %v118_v53 = vpop.permute.xlu1 %117 }
 0x1dc   :  { %v120_v54 = vmul.f32 %v118_v53, %v280_v0  ;;  %v121_v55 = vmul.f32 %v118_v53, %v284_v1  ;;  %v138_v56 = vmul.f32 %v118_v53, %v74_v13  ;;  %v139_v57 = vmul.f32 %v136_v52, %v118_v53 }
 0x1dd   :  { %v125_v58 = vpop.permute.xlu0 %124 }
 0x1de   :  { %v127_v59 = vadd.f32 %v125_v58, %v120_v54  ;;  %v128_v60 = vadd.f32 %v125_v58, %v121_v55  ;;  %v140_v61 = vadd.f32 %v138_v56, %v125_v58  ;;  %v141_v62 = vadd.f32 %v139_v57, %v125_v58 }
 0x1e0   :  { %v131_v63 = vcombine.low %v127_v59, %v128_v60  ;;  %v144_v2 = vcombine.low %v140_v61, %v141_v62 }
 0x1e2   :  { %133 = vst [vmem:[#allocation7] sm:$0xff] %v131_v63  ;;  %147 = vst [vmem:[#allocation7 + $0x8] sm:$0xff] %v144_v2 }
 0x1e3   :  { %224 = shalt.err (!%p221_p0)
}
 0x1e4   :  { %159 = dma.vmem_to_hbm [thread:$0]  %s154_s6, 256, %s313_s4, [#allocation4], %s240_s21, %s240_s21, %s241_s22  }
 0x1e5   :  { %237 = dma.done.wait [#allocation4], 256  }
 0x1e6   :  { %238 = vsyncadd [#allocation4], 4294967040 }
 0x1e7   :  { %163 = vsyncpa [#allocation3], 1 }
 0x1e8   :  { %164 = vsyncpa [#allocation4], 1 }
 0x1e9   :  { %165 = vsyncpa [#allocation5], 1 }

</bundles_post_ra>
